<compile_context>
chip_gen: v7x
topology: tpu7x:2x2x1
jax: 0.10.0
libtpu: 0.0.40
codegen_flags: <defaults>
</compile_context>

<pallas_src>
import math
import numpy as np
import jax
import jax.numpy as jnp
from jax.experimental import pallas as pl
from jax.experimental.pallas import tpu as pltpu

FEATURE_SIZES = np.array([6, 10, 2, 1, 1, 1, 1, 2, 1, 1, 2, 2, 1, 1, 1, 1, 1, 1, 2, 2, 2, 2])
EMBEDDING_SIZE = 16
K_LOG = 5
NFIELDS = int(FEATURE_SIZES.shape[0])        # 22
DEEP_LAYERS = [32, 64, 32]
TOTAL_ROWS = int(FEATURE_SIZES.sum())        # 44 real embedding rows
KDIM = 2 * TOTAL_ROWS                        # 88: [m1 rows | m2 rows]
TAB_COLS = 128                               # fused-table columns padded to full lane width

# fused-table column layout (aligned, SS pre-summed, fm1/bias folded into one scalar col)
COL_S = 0                                    # composed 2nd-order sum S        (16 lanes)
COL_H1 = COL_S + EMBEDDING_SIZE              # 16: first deep layer pre-act    (32 lanes)
COL_SC = COL_H1 + DEEP_LAYERS[0]             # 48: scalar column fm1 - 0.5*SS_lin (1 lane)
NCOLS = COL_SC + 1                           # 49 used columns

ROW_FIELD = np.repeat(np.arange(NFIELDS), FEATURE_SIZES).astype(np.int32)              # (44,)
ROW_LOCAL = np.concatenate([np.arange(int(fs)) for fs in FEATURE_SIZES]).astype(np.int32)


def embedding_sizes():
    sizes = []
    for fs in FEATURE_SIZES:
        if fs != 1:
            sizes.append(int(math.ceil(K_LOG * math.log(float(fs)))))
        else:
            sizes.append(1)
    return sizes


# ----------------------------------------------------------------------------
# Pallas kernel (one batch tile per grid step)
# ----------------------------------------------------------------------------
def deepcell_kernel(m12_ref, tab_ref, w2_ref, w3_ref, vecs_ref, out_ref):
    # m12_ref : (TB, 88)  f32  [sum_f w_f*onehot_f | sum_f w_f^2*onehot_f] (built in wrapper)
    # tab_ref : (88, 128) f32  fused row tables (VMEM-resident, constant index_map)
    # w2_ref  : (32, 64), w3_ref : (64, 32) deep Linear weights (x @ W form)
    # vecs_ref: (8, 128)  f32  row0: constant column offsets (sum b | b@W1+b1 | bias-0.5*sum b^2)
    #                          row1: b2(64)  row2: b3(32)  row3: w4(32)  row4: b4(1)
    # out_ref : (TB, 1)   f32

    # ONE K=88 MXU matmul produces S, the first-deep-layer pre-activation and the
    # scalar (fm1 - 0.5*SS_linear) column simultaneously.
    g = (jnp.dot(m12_ref[...], tab_ref[...], preferred_element_type=jnp.float32)
         + vecs_ref[0:1, :])                                              # (TB, 128)

    s = g[:, COL_S:COL_S + EMBEDDING_SIZE]                                # (TB, 16)
    fm = g[:, COL_SC:COL_SC + 1] + 0.5 * jnp.sum(s * s, axis=1, keepdims=True)

    # Deep MLP (Linear + ReLU; dropout = identity in eval mode). Layer 1 is in g.
    h = jnp.maximum(g[:, COL_H1:COL_H1 + DEEP_LAYERS[0]], 0.0)            # (TB, 32)
    h = jnp.maximum(jnp.dot(h, w2_ref[...], preferred_element_type=jnp.float32)
                    + vecs_ref[1:2, 0:DEEP_LAYERS[1]], 0.0)               # (TB, 64)
    h = jnp.maximum(jnp.dot(h, w3_ref[...], preferred_element_type=jnp.float32)
                    + vecs_ref[2:3, 0:DEEP_LAYERS[2]], 0.0)               # (TB, 32)
    # last layer (32 -> 1) on VPU/XLU instead of an N=1 MXU matmul
    h4 = jnp.maximum(jnp.sum(h * vecs_ref[3:4, 0:DEEP_LAYERS[2]], axis=1, keepdims=True)
                     + vecs_ref[4:5, 0:1], 0.0)

    out_ref[...] = fm + h4


# ----------------------------------------------------------------------------
# Parameter init (deterministic) — mirrors the PyTorch module's shapes
# ----------------------------------------------------------------------------
def init_params(key):
    emb_sizes = embedding_sizes()
    params = {'emb1': [], 'emb2': [], 'lin_w': [], 'lin_b': [],
              'deep_w': [], 'deep_b': []}
    k_e1, k_e2, k_lw, k_lb, k_dw, k_db, k_bias = jax.random.split(key, 7)
    for i, fs in enumerate(FEATURE_SIZES):
        fs = int(fs)
        params['emb1'].append(0.1 * jax.random.normal(jax.random.fold_in(k_e1, i), (fs, 1), jnp.float32))
        params['emb2'].append(0.1 * jax.random.normal(jax.random.fold_in(k_e2, i), (fs, emb_sizes[i]), jnp.float32))
        params['lin_w'].append(0.1 * jax.random.normal(jax.random.fold_in(k_lw, i), (EMBEDDING_SIZE, emb_sizes[i]), jnp.float32))
        params['lin_b'].append(0.1 * jax.random.normal(jax.random.fold_in(k_lb, i), (EMBEDDING_SIZE,), jnp.float32))
    dims = [NFIELDS * EMBEDDING_SIZE] + DEEP_LAYERS + [1]
    for i in range(len(dims) - 1):
        params['deep_w'].append(0.1 * jax.random.normal(jax.random.fold_in(k_dw, i), (dims[i + 1], dims[i]), jnp.float32))
        params['deep_b'].append(0.1 * jax.random.normal(jax.random.fold_in(k_db, i), (dims[i + 1],), jnp.float32))
    params['bias'] = jax.random.normal(k_bias, (1,), jnp.float32)
    return params


# ----------------------------------------------------------------------------
# Fuse / pad all weights into the lane-dense tables the kernel consumes.
# Algebra:  v_f = w_f * c_f + b_f  with c_f = E2_f[x_f] @ Wlin_f^T, so
#   S             = M1 @ [c_r]                                    + sum_f b_f
#   deep layer 1  = M1 @ [c_r @ W1_f]                             + sum_f b_f @ W1_f + b1
#   fm1 - 0.5*SS  = M1 @ [e_r - b_f.c_r] + M2 @ [-0.5*|c_r|^2]    - 0.5*sum_f |b_f|^2
#   out = (fm1 - 0.5*SS + bias) + 0.5*|S|^2 + deep_out
# ----------------------------------------------------------------------------
def prepare_kernel_args(params):
    w1_fields = params['deep_w'][0].T.reshape(NFIELDS, EMBEDDING_SIZE, DEEP_LAYERS[0])  # (22,16,32)
    t1_rows, t2_sc = [], []
    for f in range(NFIELDS):
        e = params['emb1'][f][:, 0]                                # (fs,) first-order value
        c = params['emb2'][f] @ params['lin_w'][f].T               # (fs, 16) composed 2nd-order
        b = params['lin_b'][f]                                     # (16,)
        sc = e - c @ b                                             # fm1 - 0.5*(2 b.c) per row
        t1_rows.append(jnp.concatenate([c, c @ w1_fields[f], sc[:, None]], axis=1))  # (fs, 49)
        t2_sc.append(-0.5 * jnp.sum(c * c, axis=1))                # (fs,) -0.5*|c|^2
    t1 = jnp.pad(jnp.concatenate(t1_rows, axis=0), ((0, 0), (0, TAB_COLS - NCOLS)))   # (44,128)
    t2 = jnp.pad(jnp.concatenate(t2_sc)[:, None], ((0, 0), (COL_SC, TAB_COLS - NCOLS)))
    tab = jnp.concatenate([t1, t2], axis=0)                        # (88, 128)

    bsum = sum(params['lin_b'])                                    # (16,)
    bsq = sum(jnp.sum(b * b) for b in params['lin_b'])             # scalar
    h1c = sum(params['lin_b'][f] @ w1_fields[f] for f in range(NFIELDS)) + params['deep_b'][0]  # (32,)
    cvec = jnp.concatenate([bsum, h1c,
                            params['bias'] - 0.5 * bsq,
                            jnp.zeros((TAB_COLS - NCOLS,), jnp.float32)])             # (128,)

    def _row(v):
        v = v.astype(jnp.float32)
        return jnp.pad(v, (0, TAB_COLS - v.shape[0]))

    zero = jnp.zeros((TAB_COLS,), jnp.float32)
    vecs = jnp.stack([cvec,
                      _row(params['deep_b'][1]),        # b2 (64)
                      _row(params['deep_b'][2]),        # b3 (32)
                      _row(params['deep_w'][3][0]),     # w4 (32)
                      _row(params['deep_b'][3]),        # b4 (1)
                      zero, zero, zero], axis=0)        # (8, 128)

    w2 = params['deep_w'][1].T                                     # (32, 64)
    w3 = params['deep_w'][2].T                                     # (64, 32)
    return tab, w2, w3, vecs


def _round_up(x, m):
    return ((x + m - 1) // m) * m


def deepcell_forward(X, weight, params, tb=2048):
    # TODO(synk): training-mode dropout not implemented (eval-mode identity only).
    B = X.shape[0]

    # Weighted multi-hot over the 44 real embedding rows, built with an exact
    # integer compare (no float-equality hit mask, no in-kernel expansion matmul).
    rf = jnp.asarray(ROW_FIELD)
    rl = jnp.asarray(ROW_LOCAL)
    w_exp = weight.astype(jnp.float32)[:, rf]                      # (B, 44)
    hit = X.astype(jnp.int32)[:, rf] == rl[None, :]
    m1 = jnp.where(hit, w_exp, 0.0)                                # sum_f w_f   * onehot_f
    m12 = jnp.concatenate([m1, m1 * w_exp], axis=1)                # (B, 88): [m1 | m2]

    # Batch tile: multiple of 128 when possible, capped so the grid has >=2 steps
    # (v7x has 2 TensorCores; the "parallel" batch axis is how work reaches TC1).
    if B <= 128:
        TB = _round_up(B, 8)
    else:
        TB = min(_round_up(min(tb, B), 128), _round_up((B + 1) // 2, 128))
    Bp = _round_up(B, TB)
    if Bp != B:
        # Padded rows are zero-filled; they produce finite (constant-only) outputs
        # that are sliced off below — never reduce over the padded region.
        m12 = jnp.pad(m12, ((0, Bp - B), (0, 0)))

    consts = prepare_kernel_args(params)
    const_specs = [pl.BlockSpec(c.shape, lambda i: (0, 0)) for c in consts]
    out = pl.pallas_call(
        deepcell_kernel,
        out_shape=jax.ShapeDtypeStruct((Bp, 1), jnp.float32),
        grid=(Bp // TB,),
        in_specs=[pl.BlockSpec((TB, KDIM), lambda i: (i, 0))] + const_specs,
        out_specs=pl.BlockSpec((TB, 1), lambda i: (i, 0)),
        compiler_params=pltpu.CompilerParams(dimension_semantics=("parallel",)),
    )(m12, *consts)
    return out[:B, 0]


# ----------------------------------------------------------------------------
# Pure-JAX reference (mirrors the PyTorch forward, dropout in eval mode)
# ----------------------------------------------------------------------------
def reference_forward(X, W, params):
    fm1 = jnp.concatenate(
        [W[:, i:i + 1] * params['emb1'][i][X[:, i]] for i in range(NFIELDS)], axis=1)
    emb2 = [W[:, i:i + 1] * params['emb2'][i][X[:, i]] for i in range(NFIELDS)]
    lin = [emb2[i] @ params['lin_w'][i].T + params['lin_b'][i][None, :] for i in range(NFIELDS)]
    s = sum(lin)
    ss = sum(l * l for l in lin)
    fm2 = 0.5 * (s * s - ss)
    h = jnp.concatenate(lin, axis=1)
    for Wd, bd in zip(params['deep_w'], params['deep_b']):
        h = jnp.maximum(h @ Wd.T + bd[None, :], 0.0)
    return fm1.sum(1) + fm2.sum(1) + h.reshape(-1) + params['bias']


if __name__ == "__main__":
    key = jax.random.PRNGKey(0)
    kx, kw, kp = jax.random.split(key, 3)
    params = init_params(kp)

    def make_inputs(kx_, kw_, B):
        X_cols = [jax.random.randint(jax.random.fold_in(kx_, i), (B,), 0, int(fs))
                  for i, fs in enumerate(FEATURE_SIZES)]
        X_ = jnp.stack(X_cols, axis=1).astype(jnp.int32)           # (B, 22)
        W_ = jax.random.normal(kw_, (B, NFIELDS), jnp.float32)     # (B, 22)
        return X_, W_

    # small single-tile case
    X, W = make_inputs(kx, kw, 8)
    out = jax.block_until_ready(deepcell_forward(X, W, params))
    ref = reference_forward(X, W, params)
    assert out.shape == (8,)
    if not np.allclose(np.asarray(out), np.asarray(ref), rtol=1e-4, atol=1e-4):
        raise AssertionError("Pallas kernel output does not match reference (B=8)")

    # multi-tile case exercising the >=2-step batch grid + padding path
    X2, W2 = make_inputs(jax.random.fold_in(kx, 101), jax.random.fold_in(kw, 202), 300)
    out2 = jax.block_until_ready(deepcell_forward(X2, W2, params))
    ref2 = reference_forward(X2, W2, params)
    if not np.allclose(np.asarray(out2), np.asarray(ref2), rtol=1e-4, atol=1e-4):
        raise AssertionError("Pallas kernel output does not match reference (B=300)")

    print("KERNEL_OK")
</pallas_src>

<mosaic_0001>
module attributes {stable_mosaic.version = 11 : i64} {
  func.func @deepcell_kernel(%arg0: i32, %arg1: memref<8x88xf32, #tpu.memory_space<vmem>>, %arg2: memref<88x128xf32, #tpu.memory_space<vmem>>, %arg3: memref<32x64xf32, #tpu.memory_space<vmem>>, %arg4: memref<64x32xf32, #tpu.memory_space<vmem>>, %arg5: memref<8x128xf32, #tpu.memory_space<vmem>>, %arg6: memref<8x1xf32, #tpu.memory_space<vmem>>) attributes {dimension_semantics = [#tpu.dimension_semantics<parallel>], iteration_bounds = array<i64: 1>, scalar_prefetch = 0 : i64, scratch_operands = 0 : i64, tpu.core_type = #tpu.core_type<tc>, window_params = [{transform_indices = @transform_0, window_bounds = array<i64: 8, 88>}, {pipeline_mode = #tpu.pipeline_mode<synchronous>, transform_indices = @transform_1, window_bounds = array<i64: 88, 128>}, {pipeline_mode = #tpu.pipeline_mode<synchronous>, transform_indices = @transform_2, window_bounds = array<i64: 32, 64>}, {pipeline_mode = #tpu.pipeline_mode<synchronous>, transform_indices = @transform_3, window_bounds = array<i64: 64, 32>}, {pipeline_mode = #tpu.pipeline_mode<synchronous>, transform_indices = @transform_4, window_bounds = array<i64: 8, 128>}, {transform_indices = @transform_5, window_bounds = array<i64: 8, 1>}]} {
    %c0 = arith.constant 0 : index
    %c0_0 = arith.constant 0 : index
    %0 = vector.load %arg1[%c0, %c0_0] : memref<8x88xf32, #tpu.memory_space<vmem>>, vector<8x88xf32>
    %c0_1 = arith.constant 0 : index
    %c0_2 = arith.constant 0 : index
    %1 = vector.load %arg2[%c0_1, %c0_2] : memref<88x128xf32, #tpu.memory_space<vmem>>, vector<88x128xf32>
    %cst = arith.constant dense<0.000000e+00> : vector<8x128xf32>
    %2 = tpu.matmul %0, %1, %cst {dimension_numbers = #tpu.dot_dimension_numbers<[1], [0], [0], [1], [0, 0, 1, 1], [], []>} : vector<8x88xf32>, vector<88x128xf32>, vector<8x128xf32> -> vector<8x128xf32>
    %c0_3 = arith.constant 0 : index
    %c0_4 = arith.constant 0 : index
    %3 = vector.load %arg5[%c0_3, %c0_4] : memref<8x128xf32, #tpu.memory_space<vmem>>, vector<1x128xf32>
    %4 = vector.broadcast %3 : vector<1x128xf32> to vector<8x128xf32>
    %5 = arith.addf %2, %4 : vector<8x128xf32>
    %6 = vector.extract_strided_slice %5 {offsets = [0, 0], sizes = [8, 16], strides = [1, 1]} : vector<8x128xf32> to vector<8x16xf32>
    %7 = vector.extract_strided_slice %5 {offsets = [0, 48], sizes = [8, 1], strides = [1, 1]} : vector<8x128xf32> to vector<8x1xf32>
    %8 = arith.mulf %6, %6 : vector<8x16xf32>
    %cst_5 = arith.constant dense<0.000000e+00> : vector<8xf32>
    %9 = vector.multi_reduction <add>, %8, %cst_5 [1] : vector<8x16xf32> to vector<8xf32>
    %10 = vector.shape_cast %9 : vector<8xf32> to vector<8x1xf32>
    %cst_6 = arith.constant 5.000000e-01 : f32
    %11 = vector.broadcast %cst_6 : f32 to vector<8x1xf32>
    %12 = arith.mulf %11, %10 : vector<8x1xf32>
    %13 = arith.addf %7, %12 : vector<8x1xf32>
    %14 = vector.extract_strided_slice %5 {offsets = [0, 16], sizes = [8, 32], strides = [1, 1]} : vector<8x128xf32> to vector<8x32xf32>
    %cst_7 = arith.constant 0.000000e+00 : f32
    %15 = vector.broadcast %cst_7 : f32 to vector<8x32xf32>
    %16 = arith.maximumf %14, %15 : vector<8x32xf32>
    %c0_8 = arith.constant 0 : index
    %c0_9 = arith.constant 0 : index
    %17 = vector.load %arg3[%c0_8, %c0_9] : memref<32x64xf32, #tpu.memory_space<vmem>>, vector<32x64xf32>
    %cst_10 = arith.constant dense<0.000000e+00> : vector<8x64xf32>
    %18 = tpu.matmul %16, %17, %cst_10 {dimension_numbers = #tpu.dot_dimension_numbers<[1], [0], [0], [1], [0, 0, 1, 1], [], []>} : vector<8x32xf32>, vector<32x64xf32>, vector<8x64xf32> -> vector<8x64xf32>
    %c1 = arith.constant 1 : index
    %c0_11 = arith.constant 0 : index
    %19 = vector.load %arg5[%c1, %c0_11] : memref<8x128xf32, #tpu.memory_space<vmem>>, vector<1x64xf32>
    %20 = vector.broadcast %19 : vector<1x64xf32> to vector<8x64xf32>
    %21 = arith.addf %18, %20 : vector<8x64xf32>
    %cst_12 = arith.constant 0.000000e+00 : f32
    %22 = vector.broadcast %cst_12 : f32 to vector<8x64xf32>
    %23 = arith.maximumf %21, %22 : vector<8x64xf32>
    %c0_13 = arith.constant 0 : index
    %c0_14 = arith.constant 0 : index
    %24 = vector.load %arg4[%c0_13, %c0_14] : memref<64x32xf32, #tpu.memory_space<vmem>>, vector<64x32xf32>
    %cst_15 = arith.constant dense<0.000000e+00> : vector<8x32xf32>
    %25 = tpu.matmul %23, %24, %cst_15 {dimension_numbers = #tpu.dot_dimension_numbers<[1], [0], [0], [1], [0, 0, 1, 1], [], []>} : vector<8x64xf32>, vector<64x32xf32>, vector<8x32xf32> -> vector<8x32xf32>
    %c2 = arith.constant 2 : index
    %c0_16 = arith.constant 0 : index
    %26 = vector.load %arg5[%c2, %c0_16] : memref<8x128xf32, #tpu.memory_space<vmem>>, vector<1x32xf32>
    %27 = vector.broadcast %26 : vector<1x32xf32> to vector<8x32xf32>
    %28 = arith.addf %25, %27 : vector<8x32xf32>
    %cst_17 = arith.constant 0.000000e+00 : f32
    %29 = vector.broadcast %cst_17 : f32 to vector<8x32xf32>
    %30 = arith.maximumf %28, %29 : vector<8x32xf32>
    %c3 = arith.constant 3 : index
    %c0_18 = arith.constant 0 : index
    %31 = vector.load %arg5[%c3, %c0_18] : memref<8x128xf32, #tpu.memory_space<vmem>>, vector<1x32xf32>
    %32 = vector.broadcast %31 : vector<1x32xf32> to vector<8x32xf32>
    %33 = arith.mulf %30, %32 : vector<8x32xf32>
    %cst_19 = arith.constant dense<0.000000e+00> : vector<8xf32>
    %34 = vector.multi_reduction <add>, %33, %cst_19 [1] : vector<8x32xf32> to vector<8xf32>
    %35 = vector.shape_cast %34 : vector<8xf32> to vector<8x1xf32>
    %c4 = arith.constant 4 : index
    %c0_20 = arith.constant 0 : index
    %36 = vector.load %arg5[%c4, %c0_20] : memref<8x128xf32, #tpu.memory_space<vmem>>, vector<1x1xf32>
    %37 = vector.broadcast %36 : vector<1x1xf32> to vector<8x1xf32>
    %38 = arith.addf %35, %37 : vector<8x1xf32>
    %cst_21 = arith.constant 0.000000e+00 : f32
    %39 = vector.broadcast %cst_21 : f32 to vector<8x1xf32>
    %40 = arith.maximumf %38, %39 : vector<8x1xf32>
    %41 = arith.addf %13, %40 : vector<8x1xf32>
    %c0_22 = arith.constant 0 : index
    %c0_23 = arith.constant 0 : index
    %42 = vector.load %arg6[%c0_22, %c0_23] : memref<8x1xf32, #tpu.memory_space<vmem>>, vector<8x1xf32>
    tpu.vector_store %arg6[%c0_22, %c0_23], %41 {strides = array<i32>} : memref<8x1xf32, #tpu.memory_space<vmem>>, vector<8x1xf32>,
    return
  }
  func.func @transform_0(%arg0: i32) -> (i32, i32) {
    %c0_i32 = arith.constant 0 : i32
    %c0_i32_0 = arith.constant 0 : i32
    return %arg0, %c0_i32 : i32, i32
  }
  func.func @transform_1(%arg0: i32) -> (i32, i32) {
    %c0_i32 = arith.constant 0 : i32
    %c0_i32_0 = arith.constant 0 : i32
    %c0_i32_1 = arith.constant 0 : i32
    return %c0_i32, %c0_i32_0 : i32, i32
  }
  func.func @transform_2(%arg0: i32) -> (i32, i32) {
    %c0_i32 = arith.constant 0 : i32
    %c0_i32_0 = arith.constant 0 : i32
    %c0_i32_1 = arith.constant 0 : i32
    return %c0_i32, %c0_i32_0 : i32, i32
  }
  func.func @transform_3(%arg0: i32) -> (i32, i32) {
    %c0_i32 = arith.constant 0 : i32
    %c0_i32_0 = arith.constant 0 : i32
    %c0_i32_1 = arith.constant 0 : i32
    return %c0_i32, %c0_i32_0 : i32, i32
  }
  func.func @transform_4(%arg0: i32) -> (i32, i32) {
    %c0_i32 = arith.constant 0 : i32
    %c0_i32_0 = arith.constant 0 : i32
    %c0_i32_1 = arith.constant 0 : i32
    return %c0_i32, %c0_i32_0 : i32, i32
  }
  func.func @transform_5(%arg0: i32) -> (i32, i32) {
    %c0_i32 = arith.constant 0 : i32
    %c0_i32_0 = arith.constant 0 : i32
    return %arg0, %c0_i32 : i32, i32
  }
}

</mosaic_0001>

<bundles_post_ra>
// kernel: tpu_custom_call.1
= control target key start
LH: loop header
LB: loop body
LE: loop exit
PB: predicated region body
PF: predicated region fallthrough
CT: control target
= control target key end

     0   :  { %10 = vsyncpa [#allocation3], 0  ;;  %s494_s18 = smov [#allocation2]   ;;  %s643_s0 = inlined_call_operand.vmem [shape: f32[8,88], index: 0, kind: input, shape index: {}]   ;;  %s644_s1 = inlined_call_operand.vmem [shape: f32[88,128], index: 1, kind: input, shape index: {}]   ;;  %s645_s2 = inlined_call_operand.hbm [shape: f32[32,64], index: 2, kind: input, shape index: {}]   ;;  %s646_s3 = inlined_call_operand.vmem [shape: f32[64,32], index: 3, kind: input, shape index: {}]   ;;  %s647_s4 = inlined_call_operand.vmem [shape: f32[8,128], index: 4, kind: input, shape index: {}]   ;;  %s648_s5 = inlined_call_operand.vmem [shape: f32[8,1], index: 5, kind: output, shape index: {}]  }
   0x1   :  { %s20_s19 = sshll.u32 %s494_s18, 4  ;;  %s470_s22 = scalar_lea.hbm %s645_s2, 512  ;;  %s21_s19 = int_to_ptr.vmem [resolvable:$true] %s20_s19 }
   0x2   :  { %p471_p0 = scmp.ne.s32.totalorder %s645_s2, %s470_s22  ;;  %p474_p1 = scmp.lt.u32.totalorder %s470_s22, %s645_s2 }
   0x4   :  { %p476_p2 = pnand %p474_p1, %p471_p0 }
   0x6   :  { %479 = shalt.err (!%p476_p2)
}
   0x7   :  { %s480_s27 = scalar_lea.vmem %s21_s19, 512  ;;  %p485_p4 = scmp.lt.s32.totalorder %s21_s19, %s21_s19 }
   0x8   :  { %p481_p3 = scmp.ne.s32.totalorder %s21_s19, %s480_s27  ;;  %p486_p5 = scmp.lt.s32.totalorder %s480_s27, %s480_s27 }
   0xa   :  { %p487_p6 = por %p486_p5, %p485_p4 }
   0xc   :  { %p488_p7 = pnand %p487_p6, %p481_p3 }
   0xe   :  { %491 = shalt.err (!%p488_p7)
}
   0xf   :  { %s495_s28 = smov 128   ;;  %s496_s29 = smov 8  }
  0x10   :  { %26 = dma.hbm_to_vmem [thread:$0]  %s645_s2, 512, %s21_s19, [#allocation3], %s495_s28, %s495_s28, %s496_s29  }
  0x11   :  { %492 = dma.done.wait [#allocation3], 512  }
  0x12   :  { %493 = vsyncadd [#allocation3], 4294966784  ;;  %v497_v0 = vmov 0.0|0.0   ;;  %vm498_vm0 = vmmov 0   ;;  %v499_v1 = vmov 0.0   ;;  %v35_v2 = vld [vmem:[%s644_s1] sm:$0xff] }
  0x13   :  { %428 = vmatprep.subr.bf16.mxu0 %v497_v0  ;;  %395 = vmatprep.mubr.msk.f32.mxu0 %vm498_vm0, %v499_v1  ;;  %v36_v3 = vld [vmem:[%s644_s1 + $0x8] sm:$0xff]  ;;  %v37_v4 = vld [vmem:[%s644_s1 + $0x10] sm:$0xff]  ;;  %v38_v6 = vld [vmem:[%s644_s1 + $0x18] sm:$0xff]  ;;  %vm51_vm1 = vcmask 719872   ;;  %vm126_vm2 = vcmask 130048   ;;  %vm145_vm3 = vcmask 261120  }
  0x14   :  { %443 = vmatprep.subr.bf16.mxu1 %v497_v0  ;;  %406 = vmatprep.mubr.msk.f32.mxu1 %vm498_vm0, %v499_v1  ;;  %v429_v5 = vpack.c.bf16 %v36_v3, %v35_v2  ;;  %v432_v7 = vpack.c.bf16 %v38_v6, %v37_v4  ;;  %v39_v8 = vld [vmem:[%s644_s1 + $0x20] sm:$0xff]  ;;  %v40_v9 = vld [vmem:[%s644_s1 + $0x28] sm:$0xff]  ;;  %v41_v11 = vld [vmem:[%s644_s1 + $0x30] sm:$0xff]  ;;  %vm232_vm4 = vcmask 523264   ;;  %s501_s28 = smov 48   ;;  %s502_s29 = smov 80  }
  0x15   :  { %v435_v10 = vpack.c.bf16 %v40_v9, %v39_v8  ;;  %v42_v12 = vld [vmem:[%s644_s1 + $0x38] sm:$0xff]  ;;  %v43_v14 = vld [vmem:[%s644_s1 + $0x40] sm:$0xff]  ;;  %v44_v15 = vld [vmem:[%s644_s1 + $0x48] sm:$0xff]  ;;  %vm332_vm5 = vcmask 7168  }
  0x16   :  { %430 = vmatpush3.bf16.msra.mxu0 %v429_v5  ;;  %v438_v13 = vpack.c.bf16 %v42_v12, %v41_v11  ;;  %v441_v16 = vpack.c.bf16 %v44_v15, %v43_v14  ;;  %v45_v17 = vld [vmem:[%s644_s1 + $0x50] sm:$0xff]  ;;  %v34_v18 = vld [vmem:[%s643_s0] sm:$0xff]  ;;  %v134_v20 = vld [vmem:[#allocation2 + $0x8] sm:$0xff]  ;;  %s500_s0 = smov 112  }
  0x17   :  { %431 = vmatprep.subr.bf16.mxu0 %v497_v0  ;;  %v133_v19 = vld [vmem:[#allocation2] sm:$0xff]  ;;  %v135_v21 = vld [vmem:[#allocation2 + $0x10] sm:$0xff]  ;;  %v136_v23 = vld [vmem:[#allocation2 + $0x18] sm:$0xff] }
  0x18   :  { %v444_v22 = vpack.c.bf16 %v134_v20, %v133_v19  ;;  %v447_v24 = vpack.c.bf16 %v136_v23, %v135_v21  ;;  %v339_v25 = vld [vmem:[%s647_s4] ss:$0 sm:$0xff]  ;;  %v220_v33 = vld [vmem:[%s646_s3 + $0x8] sm:$0xff]  ;;  %v221_v35 = vld [vmem:[%s646_s3 + $0x10] sm:$0xff] }
  0x19   :  { %v219_v32 = vld [vmem:[%s646_s3] sm:$0xff]  ;;  %v222_v36 = vld [vmem:[%s646_s3 + $0x18] sm:$0xff]  ;;  %v224_v40 = vld [vmem:[%s646_s3 + $0x28] sm:$0xff] }
  0x1a   :  { %433 = vmatpush3.bf16.msra.mxu0 %v432_v7  ;;  %445 = vmatpush3.bf16.msra.mxu1 %v444_v22  ;;  %v450_v34 = vpack.c.bf16 %v220_v33, %v219_v32  ;;  %v453_v38 = vpack.c.bf16 %v222_v36, %v221_v35  ;;  %v223_v39 = vld [vmem:[%s646_s3 + $0x20] sm:$0xff]  ;;  %v225_v42 = vld [vmem:[%s646_s3 + $0x30] sm:$0xff]  ;;  %v226_v43 = vld [vmem:[%s646_s3 + $0x38] sm:$0xff] }
  0x1b   :  { %434 = vmatprep.subr.bf16.mxu0 %v497_v0  ;;  %446 = vmatprep.subr.bf16.mxu1 %v497_v0  ;;  %v456_v41 = vpack.c.bf16 %v224_v40, %v223_v39  ;;  %v459_v44 = vpack.c.bf16 %v226_v43, %v225_v42  ;;  %v341_v45 = vld [vmem:[%s647_s4 + $0x1] ss:$0 sm:$0xff]  ;;  %v343_v50 = vld [vmem:[%s647_s4 + $0x2] ss:$0 sm:$0xff]  ;;  %v345_v54 = vld [vmem:[%s647_s4 + $0x3] ss:$0 sm:$0xff] }
  0x1c   :  { %v346_v58 = vld [vmem:[%s647_s4 + $0x4] ss:$0 sm:$0xff] }
  0x1e   :  { %436 = vmatpush3.bf16.msra.mxu0 %v435_v10  ;;  %448 = vmatpush3.bf16.msra.mxu1 %v447_v24 }
  0x1f   :  { %437 = vmatprep.subr.bf16.mxu0 %v497_v0  ;;  %449 = vmatprep.subr.bf16.mxu1 %v497_v0 }
  0x22   :  { %439 = vmatpush3.bf16.msra.mxu0 %v438_v13 }
  0x23   :  { %440 = vmatprep.subr.bf16.mxu0 %v497_v0 }
  0x26   :  { %442 = vmatpush3.bf16.msra.mxu0 %v441_v16 }
  0x27   :  { %393 = vmatprep.subr.mxu0 %v499_v1 }
  0x2a   :  { %394 = vmatpush3.msra.mxu0 %v45_v17 }
  0x2b   :  { %396 = vmatmul.mubr.msk.f32.vlgmr.msra.gmra.mrb[0].mxu0 %vm51_vm1, %v34_v18 }
  0xfe   :  { %v121_v26 = vpop.f32.mrb[0].mxu0 }
  0xff   :  { %v122_v27 = vadd.f32 %v339_v25, %v121_v26  ;;  %v397_v28 = vpop.f32.mrb[1].mxu0 }
 0x101   :  { %v132_v29 = vmax.f32 %v122_v27, 0.0  ;;  %v125_v30 = vmul.f32 %v122_v27, %v122_v27 }
 0x103   :  { %143 = vrot.lane.b32.xlu0 %v132_v29, %s500_s0  ;;  %v127_v31 = vsel %vm126_vm2, %v125_v30, 0.0 }
 0x104   :  { %128 = vadd.xlane.f32.xlu1 %v127_v31 }
 0x175   :  { %v144_v37 = vpop.permute.xlu0 %143 }
 0x176   :  { %407 = vmatmul.mubr.msk.f32.vlgmr.msra.gmra.mrb[0].mxu1 %vm145_vm3, %v144_v37 }
 0x177   :  { %451 = vmatpush3.bf16.msra.mxu1 %v450_v34  ;;  %425 = vmatprep.mubr.msk.f32.mxu1 %vm498_vm0, %v499_v1 }
 0x178   :  { %452 = vmatprep.subr.bf16.mxu1 %v497_v0 }
 0x17b   :  { %454 = vmatpush3.bf16.msra.mxu1 %v453_v38 }
 0x17c   :  { %455 = vmatprep.subr.bf16.mxu1 %v497_v0 }
 0x17f   :  { %457 = vmatpush3.bf16.msra.mxu1 %v456_v41 }
 0x180   :  { %458 = vmatprep.subr.bf16.mxu1 %v497_v0 }
 0x183   :  { %460 = vmatpush3.bf16.msra.mxu1 %v459_v44 }
 0x191   :  { %v129_v62 = vpop.xlane.xlu1 %128 }
 0x192   :  { %v130_v63 = vmul.f32 0.5, %v129_v62 }
 0x194   :  { %v131_v0 = vadd.f32 %v130_v63, %v122_v27 }
 0x249   :  { %v214_v46 = vpop.f32.mrb[0].mxu1 }
 0x24a   :  { %v215_v47 = vadd.f32 %v341_v45, %v214_v46  ;;  %v408_v48 = vpop.f32.mrb[1].mxu1 }
 0x24c   :  { %v218_v49 = vmax.f32 %v215_v47, 0.0 }
 0x24e   :  { %426 = vmatmul.mubr.msk.f32.vlgmr.msra.gmra.mrb[2].mxu1 %vm232_vm4, %v218_v49 }
 0x321   :  { %v302_v51 = vpop.f32.mrb[2].mxu1 }
 0x322   :  { %v303_v52 = vadd.f32 %v343_v50, %v302_v51  ;;  %v427_v53 = vpop.f32.mrb[3].mxu1 }
 0x324   :  { %v306_v55 = vmax.f32 %v303_v52, 0.0 }
 0x326   :  { %v312_v56 = vmul.f32 %v345_v54, %v306_v55 }
 0x328   :  { %v313_v57 = vsel %vm145_vm3, %v312_v56, 0.0 }
 0x329   :  { %314 = vadd.xlane.f32.xlu0 %v313_v57 }
 0x3b6   :  { %v315_v59 = vpop.xlane.xlu0 %314 }
 0x3b7   :  { %v321_v60 = vadd.f32 %v346_v58, %v315_v59 }
 0x3b9   :  { %v322_v61 = vmax.f32 %v321_v60, 0.0 }
 0x3bb   :  { %324 = vrot.lane.b32.xlu1 %v322_v61, %s501_s28 }
 0x42d   :  { %v325_v1 = vpop.permute.xlu1 %324 }
 0x42e   :  { %v327_v2 = vadd.f32 %v325_v1, %v131_v0 }
 0x430   :  { %329 = vrot.lane.b32.xlu1 %v327_v2, %s502_s29 }
 0x4a2   :  { %v330_v3 = vpop.permute.xlu1 %329 }
 0x4a3   :  { %333 = vst.msk [vmem:[%s648_s5] sm:$0xff] %vm332_vm5, %v330_v3 }
 0x4a4   :  { %338 = vsyncpa [#allocation3], 1 }

</bundles_post_ra>
